<compile_context>
chip_gen: v6e
topology: v6e:2x2x1
jax: 0.10.0
libtpu: 0.0.40
codegen_flags: <defaults>
</compile_context>

<pallas_src>
import math
import functools

import jax
import jax.numpy as jnp
from jax.experimental import pallas as pl
from jax.experimental.pallas import tpu as pltpu

_LANE = 128


def _round_up(x, m):
    return (x + m - 1) // m * m


@functools.lru_cache(maxsize=None)
def _vmem_limit():
    """Device-aware scoped-VMEM budget: ~3/4 of per-core VMEM, capped at 96 MiB."""
    try:
        cap = int(pltpu.get_tpu_info().vmem_capacity_bytes)
    except Exception:
        cap = 128 * 1024 * 1024
    return max(32 * 1024 * 1024, min(cap * 3 // 4, 96 * 1024 * 1024))


# -----------------------------------------------------------------------------
# Pallas kernel 1: corr_fuse similarity (Gram-free, whole batch in one grid step)
# Layout: (b, c, hw) with hw on lanes, channel reductions over sublanes.
# -----------------------------------------------------------------------------
def _corr_sim_kernel(x_ref, c_ref, m_ref, xs_ref, cs_ref):
    x = x_ref[...]           # (b, c, hw) f32
    cd = c_ref[...]          # (b, c, hw)
    m = m_ref[...]           # (b, 1, hw)  mix-mask column weights
    hw = x.shape[-1]
    eps = 1e-12              # F.normalize default eps

    xn = x / jnp.maximum(jnp.sqrt(jnp.sum(x * x, axis=1, keepdims=True)), eps)
    cn = cd / jnp.maximum(jnp.sqrt(jnp.sum(cd * cd, axis=1, keepdims=True)), eps)

    # v_c = sum_j m_j * xn[c, j]     -> (b, c, 1)
    v = jnp.sum(xn * m, axis=-1, keepdims=True)
    dot_xv = jnp.sum(xn * v, axis=1)          # (b, hw)  <xn_i, v>
    dot_cv = jnp.sum(cn * v, axis=1)          # (b, hw)  <cn_i, v>
    diag_xx = jnp.sum(xn * xn, axis=1)        # (b, hw)  <xn_i, xn_i>
    diag_xc = jnp.sum(xn * cn, axis=1)        # (b, hw)  <xn_i, cn_i>
    mrow = m[:, 0, :]                         # (b, hw)

    inv_hw = 1.0 / hw
    xs_ref[...] = (dot_xv - mrow * diag_xx) * inv_hw
    cs_ref[...] = (dot_cv - mrow * diag_xc) * inv_hw


def corr_sims(x_bcs, cond_bcs, m_b1s):
    """x_bcs, cond_bcs: (b, c, hw) f32; m_b1s: (b, 1, hw) f32 -> two (b, hw) f32."""
    b, c, hw = x_bcs.shape
    return pl.pallas_call(
        _corr_sim_kernel,
        out_shape=(jax.ShapeDtypeStruct((b, hw), jnp.float32),
                   jax.ShapeDtypeStruct((b, hw), jnp.float32)),
        grid_spec=pltpu.PrefetchScalarGridSpec(
            num_scalar_prefetch=0,
            grid=(1,),
            in_specs=[pl.BlockSpec((b, c, hw), lambda i: (0, 0, 0)),
                      pl.BlockSpec((b, c, hw), lambda i: (0, 0, 0)),
                      pl.BlockSpec((b, 1, hw), lambda i: (0, 0, 0))],
            out_specs=[pl.BlockSpec((b, hw), lambda i: (0, 0)),
                       pl.BlockSpec((b, hw), lambda i: (0, 0))],
        ),
        compiler_params=pltpu.CompilerParams(
            dimension_semantics=("arbitrary",),
            vmem_limit_bytes=_vmem_limit(),
        ),
    )(x_bcs, cond_bcs, m_b1s)


# -----------------------------------------------------------------------------
# Pallas kernel 2: fused NHWC 3x3 conv + folded BN (+fused 1x1 residual path)
#                  (+LeakyReLU), in-kernel halo padding, single deep matmul.
# -----------------------------------------------------------------------------
def _conv3x3_kernel(*refs, h, w, chunk_h, slope, has_res):
    if has_res:
        x_ref, xr_ref, w_ref, b_ref, o_ref, xpad_ref = refs
    else:
        x_ref, w_ref, b_ref, o_ref, xpad_ref = refs
        xr_ref = None
    cp_in = x_ref.shape[-1]
    cp_out = o_ref.shape[-1]

    # In-kernel halo: zero the padded scratch, drop this sample's interior into it.
    xpad_ref[...] = jnp.zeros_like(xpad_ref)
    xpad_ref[pl.ds(1, h), pl.ds(1, w), :] = x_ref[...]

    wmat = w_ref[...]          # (K_total, cp_out) bf16, BN scale folded
    bias = b_ref[...]          # (1, cp_out) f32, BN shift folded

    for r0 in range(0, h, chunk_h):
        rows = min(chunk_h, h - r0)
        m_rows = rows * w
        # im2col the 9 taps (plus the fused 1x1 residual input) along the lane axis:
        # one deep matmul instead of 9 chained K=128 matmuls with a VMEM accumulator.
        pieces = []
        for dy in range(3):
            band = xpad_ref[pl.ds(r0 + dy, rows), :, :]        # (rows, w+2, cp_in) bf16
            for dx in range(3):
                win = band[:, dx:dx + w, :]
                pieces.append(win.reshape(m_rows, cp_in))
        if has_res:
            xr = xr_ref[pl.ds(r0, rows), :, :]
            pieces.append(xr.reshape(m_rows, xr_ref.shape[-1]))
        patch = jnp.concatenate(pieces, axis=-1)               # (m_rows, K_total) bf16
        acc = jnp.dot(patch, wmat, preferred_element_type=jnp.float32) + bias
        if slope is not None:
            acc = jnp.where(acc >= 0, acc, acc * slope)        # LeakyReLU
        o_ref[pl.ds(r0, rows), :, :] = acc.reshape(rows, w, cp_out).astype(o_ref.dtype)


def _chunk_rows(h, w, target=256):
    return min(h, max(1, target // max(w, 1)))


def conv3x3_bn_act(x, layer, *, residual_src=None, slope=None, out_dtype=jnp.bfloat16):
    """x: (B, H, W, cp_in) bf16 channel-padded NHWC.
    layer: {'w': (9*cp_in [+ cp_res], cp_out) bf16, 'b': (1, cp_out) f32}.
    residual_src: optional (B, H, W, cp_res) bf16 input of the fused 1x1 conv path."""
    b, h, w, cp_in = x.shape
    ktot, cp_out = layer['w'].shape
    has_res = residual_src is not None
    chunk_h = _chunk_rows(h, w)

    kernel = functools.partial(_conv3x3_kernel, h=h, w=w, chunk_h=chunk_h,
                               slope=slope, has_res=has_res)
    in_specs = [pl.BlockSpec((None, h, w, cp_in), lambda bi: (bi, 0, 0, 0))]
    args = [x]
    if has_res:
        cp_res = residual_src.shape[-1]
        in_specs.append(pl.BlockSpec((None, h, w, cp_res), lambda bi: (bi, 0, 0, 0)))
        args.append(residual_src)
    in_specs += [pl.BlockSpec((ktot, cp_out), lambda bi: (0, 0)),
                 pl.BlockSpec((1, cp_out), lambda bi: (0, 0))]
    args += [layer['w'], layer['b']]

    return pl.pallas_call(
        kernel,
        out_shape=jax.ShapeDtypeStruct((b, h, w, cp_out), out_dtype),
        grid_spec=pltpu.PrefetchScalarGridSpec(
            num_scalar_prefetch=0,
            grid=(b,),
            in_specs=in_specs,
            out_specs=pl.BlockSpec((None, h, w, cp_out), lambda bi: (bi, 0, 0, 0)),
            scratch_shapes=[pltpu.VMEM((h + 2, w + 2, cp_in), jnp.bfloat16)],
        ),
        compiler_params=pltpu.CompilerParams(
            dimension_semantics=("parallel",),      # batch across v7x megacore
            vmem_limit_bytes=_vmem_limit(),
        ),
    )(*args)


# -----------------------------------------------------------------------------
# Glue: nearest interpolation, gumbel-softmax, corr_fuse, BasicBlock, Decoder
# -----------------------------------------------------------------------------
def nearest_resize(x, oh, ow):
    """PyTorch 'nearest' interpolate, NHWC layout (bf16)."""
    b, h, w, c = x.shape
    if oh == 2 * h and ow == 2 * w:
        return jnp.repeat(jnp.repeat(x, 2, axis=1), 2, axis=2)
    iy = (jnp.arange(oh) * h) // oh
    ix = (jnp.arange(ow) * w) // ow
    return x[:, iy[:, None], ix[None, :], :]


def gumbel_softmax_hard(logits, key, tau=1.0, axis=1):
    g = jax.random.gumbel(key, logits.shape, dtype=logits.dtype)
    y_soft = jax.nn.softmax((logits + g) / tau, axis=axis)
    idx = jnp.argmax(y_soft, axis=axis)
    return jax.nn.one_hot(idx, logits.shape[axis], axis=axis, dtype=logits.dtype)


def corr_fuse(x, cond, masks, key):
    """x, cond: (b, c, h, w) NCHW f32; masks: (b, h, w).
    Returns (fused NCHW (2b, 2c, h, w), logits (b, 2, h, w))."""
    b, c, h, w = x.shape
    hw = h * w
    xs, cs = corr_sims(x.reshape(b, c, hw).astype(jnp.float32),
                       cond.reshape(b, c, hw).astype(jnp.float32),
                       masks.reshape(b, 1, hw).astype(jnp.float32))
    T = 0.1
    logits = jnp.stack([xs.reshape(b, h, w) / T, cs.reshape(b, h, w) / T], axis=1)
    action = gumbel_softmax_hard(logits, key, tau=1.0, axis=1)
    a_x = action[:, 0][:, None]                    # (b, 1, h, w)
    a_c = action[:, 1][:, None]
    feat = jnp.concatenate([a_x * x, a_c * cond], axis=1)
    cond_feat = jnp.concatenate([(1.0 - a_x) * x, (1.0 - a_c) * cond], axis=1)
    return jnp.concatenate([feat, cond_feat], axis=0), logits


def basic_block(x, p):
    slope = 0.1                                    # LeakyReLU(0.1)
    out = conv3x3_bn_act(x, p['c1'], slope=slope)
    out = conv3x3_bn_act(out, p['c2'], slope=slope)
    # conv3+BN with the 1x1 downsample+BN residual fused as extra K rows, then LeakyReLU.
    out = conv3x3_bn_act(out, p['c3d'], residual_src=x, slope=slope)
    return out


def decoder_forward(params, x, cond, masks, key):
    """x, cond: (b, c, h, w) NCHW f32. Returns (recon NCHW (2b,3,H,W), logits (b,2,h,w))."""
    act_nchw, logits = corr_fuse(x, cond, masks, key)
    # NCHW -> NHWC, pad channels to the first conv's lane width, carry bf16 from here on.
    act = jnp.transpose(act_nchw, (0, 2, 3, 1))
    cp0 = params['conv']['cp_in']
    act = jnp.pad(act, ((0, 0), (0, 0), (0, 0), (0, cp0 - act.shape[-1])))
    act = act.astype(jnp.bfloat16)
    act = conv3x3_bn_act(act, params['conv'])      # nn.Conv2d(nin, ndim, 3, pad=1)
    for bp in params['blocks']:
        act = basic_block(act, bp)
        _, h2, w2, _ = act.shape
        if bp['size'] is None:
            act = nearest_resize(act, 2 * h2, 2 * w2)
        else:
            act = nearest_resize(act, bp['size'], bp['size'])
    act = conv3x3_bn_act(act, params['out_conv'], out_dtype=jnp.float32)
    return jnp.transpose(act[..., :3], (0, 3, 1, 2)), logits


# -----------------------------------------------------------------------------
# Parameter prep: per-layer channel padding, BN folded, weights flattened for the
# single deep matmul (9*cp_in [+ cp_res], cp_out) in bf16.
# -----------------------------------------------------------------------------
def _fold_bn_identity(cout, eps=1e-5):
    gamma = jnp.ones((cout,), jnp.float32)
    beta = jnp.zeros((cout,), jnp.float32)
    mean = jnp.zeros((cout,), jnp.float32)
    var = jnp.ones((cout,), jnp.float32)
    scale = gamma / jnp.sqrt(var + eps)
    return scale, beta - mean * scale


def _pack_taps(weight, scale, cp_in, cp_out):
    """(cout, cin, kh, kw) f32 -> (kh*kw*cp_in, cp_out) f32, BN scale folded."""
    cout, cin, kh, kw = weight.shape
    if scale is not None:
        weight = weight * scale[:, None, None, None]
    wt = jnp.transpose(weight, (2, 3, 1, 0)).reshape(kh * kw, cin, cout)
    wp = jnp.zeros((kh * kw, cp_in, cp_out), jnp.float32).at[:, :cin, :cout].set(wt)
    return wp.reshape(kh * kw * cp_in, cp_out)


def _pack_layer(weight, *, cp_in, cp_out, bn=None, bias=None,
                res_weight=None, res_bn=None, cp_res=None):
    cout = weight.shape[0]
    if bn is not None:
        scale, shift = bn
    else:
        scale = None
        shift = bias if bias is not None else jnp.zeros((cout,), jnp.float32)
    wflat = _pack_taps(weight, scale, cp_in, cp_out)
    b = shift
    if res_weight is not None:
        rscale, rshift = res_bn
        wres = _pack_taps(res_weight, rscale, cp_res, cp_out)   # 1x1 -> (cp_res, cp_out)
        wflat = jnp.concatenate([wflat, wres], axis=0)
        b = b + rshift
    bp = jnp.zeros((1, cp_out), jnp.float32).at[0, :cout].set(b)
    return {'w': wflat.astype(jnp.bfloat16), 'b': bp, 'cp_in': cp_in}


def init_decoder_params(key, nin, ndim, input_size, output_size):
    num_layers = int(math.log(math.ceil(output_size / input_size), 2))
    keys = iter(jax.random.split(key, 16 + 8 * num_layers))

    def conv_w(cout, cin, k):
        fan_in = cin * k * k
        return (jax.random.normal(next(keys), (cout, cin, k, k), jnp.float32)
                / math.sqrt(fan_in))

    params = {
        'conv': _pack_layer(conv_w(ndim, nin, 3),
                            cp_in=_round_up(nin, _LANE), cp_out=_round_up(ndim, _LANE),
                            bias=0.01 * jax.random.normal(next(keys), (ndim,), jnp.float32)),
        'blocks': [],
    }
    d = ndim
    for i in range(num_layers):
        size = output_size if i == num_layers - 1 else None
        cp_x = _round_up(d, _LANE)
        cp_mid = _round_up(d // 2, _LANE)
        params['blocks'].append({
            'size': size,
            'c1': _pack_layer(conv_w(d // 2, d, 3), cp_in=cp_x, cp_out=cp_mid,
                              bn=_fold_bn_identity(d // 2)),
            'c2': _pack_layer(conv_w(d // 2, d // 2, 3), cp_in=cp_mid, cp_out=cp_mid,
                              bn=_fold_bn_identity(d // 2)),
            'c3d': _pack_layer(conv_w(d // 2, d // 2, 3), cp_in=cp_mid, cp_out=cp_mid,
                               bn=_fold_bn_identity(d // 2),
                               res_weight=conv_w(d // 2, d, 1),
                               res_bn=_fold_bn_identity(d // 2), cp_res=cp_x),
        })
        d //= 2
    params['out_conv'] = _pack_layer(
        conv_w(3, d, 3), cp_in=_round_up(d, _LANE), cp_out=_round_up(3, _LANE),
        bias=0.01 * jax.random.normal(next(keys), (3,), jnp.float32))
    return params


# -----------------------------------------------------------------------------
if __name__ == "__main__":
    # Small shapes: b=2, c=16 (nin=2c=32), ndim=32, spatial 8 -> 32 (2 upsample blocks)
    b, c, h, w = 2, 16, 8, 8
    nin, ndim = 2 * c, 32
    input_size, output_size = h, 32

    key = jax.random.PRNGKey(0)
    k_x, k_c, k_m, k_p, k_g = jax.random.split(key, 5)
    x = jax.random.normal(k_x, (b, c, h, w), jnp.float32)
    cond = jax.random.normal(k_c, (b, c, h, w), jnp.float32)
    masks = jax.random.bernoulli(k_m, 0.5, (b, h, w)).astype(jnp.float32)

    params = init_decoder_params(k_p, nin, ndim, input_size, output_size)

    out, logits = decoder_forward(params, x, cond, masks, k_g)
    out = jax.block_until_ready(out)
    logits = jax.block_until_ready(logits)

    assert out.shape == (2 * b, 3, output_size, output_size), out.shape
    assert logits.shape == (b, 2, h, w), logits.shape
    assert bool(jnp.all(jnp.isfinite(out))) and bool(jnp.all(jnp.isfinite(logits)))
    print("KERNEL_OK")
</pallas_src>

<mosaic_0001>
module attributes {stable_mosaic.version = 11 : i64} {
  func.func @_corr_sim_kernel(%arg0: i32, %arg1: memref<2x16x64xf32, #tpu.memory_space<vmem>>, %arg2: memref<2x16x64xf32, #tpu.memory_space<vmem>>, %arg3: memref<2x1x64xf32, #tpu.memory_space<vmem>>, %arg4: memref<2x64xf32, #tpu.memory_space<vmem>>, %arg5: memref<2x64xf32, #tpu.memory_space<vmem>>) attributes {dimension_semantics = [#tpu.dimension_semantics<arbitrary>], iteration_bounds = array<i64: 1>, scalar_prefetch = 0 : i64, scratch_operands = 0 : i64, tpu.core_type = #tpu.core_type<tc>, window_params = [{pipeline_mode = #tpu.pipeline_mode<synchronous>, transform_indices = @transform_0, window_bounds = array<i64: 2, 16, 64>}, {pipeline_mode = #tpu.pipeline_mode<synchronous>, transform_indices = @transform_1, window_bounds = array<i64: 2, 16, 64>}, {pipeline_mode = #tpu.pipeline_mode<synchronous>, transform_indices = @transform_2, window_bounds = array<i64: 2, 1, 64>}, {pipeline_mode = #tpu.pipeline_mode<synchronous>, transform_indices = @transform_3, window_bounds = array<i64: 2, 64>}, {pipeline_mode = #tpu.pipeline_mode<synchronous>, transform_indices = @transform_4, window_bounds = array<i64: 2, 64>}]} {
    %c0 = arith.constant 0 : index
    %c0_0 = arith.constant 0 : index
    %c0_1 = arith.constant 0 : index
    %0 = vector.load %arg1[%c0, %c0_0, %c0_1] : memref<2x16x64xf32, #tpu.memory_space<vmem>>, vector<2x16x64xf32>
    %c0_2 = arith.constant 0 : index
    %c0_3 = arith.constant 0 : index
    %c0_4 = arith.constant 0 : index
    %1 = vector.load %arg2[%c0_2, %c0_3, %c0_4] : memref<2x16x64xf32, #tpu.memory_space<vmem>>, vector<2x16x64xf32>
    %c0_5 = arith.constant 0 : index
    %c0_6 = arith.constant 0 : index
    %c0_7 = arith.constant 0 : index
    %2 = vector.load %arg3[%c0_5, %c0_6, %c0_7] : memref<2x1x64xf32, #tpu.memory_space<vmem>>, vector<2x1x64xf32>
    %3 = arith.mulf %0, %0 : vector<2x16x64xf32>
    %cst = arith.constant dense<0.000000e+00> : vector<2x64xf32>
    %4 = vector.multi_reduction <add>, %3, %cst [1] : vector<2x16x64xf32> to vector<2x64xf32>
    %5 = vector.shape_cast %4 : vector<2x64xf32> to vector<2x1x64xf32>
    %6 = math.sqrt %5 : vector<2x1x64xf32>
    %cst_8 = arith.constant 9.99999996E-13 : f32
    %7 = vector.broadcast %cst_8 : f32 to vector<2x1x64xf32>
    %8 = arith.maximumf %6, %7 : vector<2x1x64xf32>
    %9 = vector.broadcast %8 : vector<2x1x64xf32> to vector<2x16x64xf32>
    %10 = arith.divf %0, %9 : vector<2x16x64xf32>
    %11 = arith.mulf %1, %1 : vector<2x16x64xf32>
    %cst_9 = arith.constant dense<0.000000e+00> : vector<2x64xf32>
    %12 = vector.multi_reduction <add>, %11, %cst_9 [1] : vector<2x16x64xf32> to vector<2x64xf32>
    %13 = vector.shape_cast %12 : vector<2x64xf32> to vector<2x1x64xf32>
    %14 = math.sqrt %13 : vector<2x1x64xf32>
    %cst_10 = arith.constant 9.99999996E-13 : f32
    %15 = vector.broadcast %cst_10 : f32 to vector<2x1x64xf32>
    %16 = arith.maximumf %14, %15 : vector<2x1x64xf32>
    %17 = vector.broadcast %16 : vector<2x1x64xf32> to vector<2x16x64xf32>
    %18 = arith.divf %1, %17 : vector<2x16x64xf32>
    %19 = vector.broadcast %2 : vector<2x1x64xf32> to vector<2x16x64xf32>
    %20 = arith.mulf %10, %19 : vector<2x16x64xf32>
    %cst_11 = arith.constant dense<0.000000e+00> : vector<2x16xf32>
    %21 = vector.multi_reduction <add>, %20, %cst_11 [2] : vector<2x16x64xf32> to vector<2x16xf32>
    %22 = vector.shape_cast %21 : vector<2x16xf32> to vector<2x16x1xf32>
    %23 = vector.broadcast %22 : vector<2x16x1xf32> to vector<2x16x64xf32>
    %24 = arith.mulf %10, %23 : vector<2x16x64xf32>
    %cst_12 = arith.constant dense<0.000000e+00> : vector<2x64xf32>
    %25 = vector.multi_reduction <add>, %24, %cst_12 [1] : vector<2x16x64xf32> to vector<2x64xf32>
    %26 = vector.broadcast %22 : vector<2x16x1xf32> to vector<2x16x64xf32>
    %27 = arith.mulf %18, %26 : vector<2x16x64xf32>
    %cst_13 = arith.constant dense<0.000000e+00> : vector<2x64xf32>
    %28 = vector.multi_reduction <add>, %27, %cst_13 [1] : vector<2x16x64xf32> to vector<2x64xf32>
    %29 = arith.mulf %10, %10 : vector<2x16x64xf32>
    %cst_14 = arith.constant dense<0.000000e+00> : vector<2x64xf32>
    %30 = vector.multi_reduction <add>, %29, %cst_14 [1] : vector<2x16x64xf32> to vector<2x64xf32>
    %31 = arith.mulf %10, %18 : vector<2x16x64xf32>
    %cst_15 = arith.constant dense<0.000000e+00> : vector<2x64xf32>
    %32 = vector.multi_reduction <add>, %31, %cst_15 [1] : vector<2x16x64xf32> to vector<2x64xf32>
    %33 = vector.shape_cast %2 : vector<2x1x64xf32> to vector<2x64xf32>
    %34 = arith.mulf %33, %30 : vector<2x64xf32>
    %35 = arith.subf %25, %34 : vector<2x64xf32>
    %cst_16 = arith.constant 1.562500e-02 : f32
    %36 = vector.broadcast %cst_16 : f32 to vector<2x64xf32>
    %37 = arith.mulf %35, %36 : vector<2x64xf32>
    %c0_17 = arith.constant 0 : index
    %c0_18 = arith.constant 0 : index
    %38 = vector.load %arg4[%c0_17, %c0_18] : memref<2x64xf32, #tpu.memory_space<vmem>>, vector<2x64xf32>
    tpu.vector_store %arg4[%c0_17, %c0_18], %37 {strides = array<i32>} : memref<2x64xf32, #tpu.memory_space<vmem>>, vector<2x64xf32>,
    %39 = arith.mulf %33, %32 : vector<2x64xf32>
    %40 = arith.subf %28, %39 : vector<2x64xf32>
    %cst_19 = arith.constant 1.562500e-02 : f32
    %41 = vector.broadcast %cst_19 : f32 to vector<2x64xf32>
    %42 = arith.mulf %40, %41 : vector<2x64xf32>
    %c0_20 = arith.constant 0 : index
    %c0_21 = arith.constant 0 : index
    %43 = vector.load %arg5[%c0_20, %c0_21] : memref<2x64xf32, #tpu.memory_space<vmem>>, vector<2x64xf32>
    tpu.vector_store %arg5[%c0_20, %c0_21], %42 {strides = array<i32>} : memref<2x64xf32, #tpu.memory_space<vmem>>, vector<2x64xf32>,
    return
  }
  func.func @transform_0(%arg0: i32) -> (i32, i32, i32) {
    %c0_i32 = arith.constant 0 : i32
    %c0_i32_0 = arith.constant 0 : i32
    %c0_i32_1 = arith.constant 0 : i32
    %c0_i32_2 = arith.constant 0 : i32
    return %c0_i32, %c0_i32_0, %c0_i32_1 : i32, i32, i32
  }
  func.func @transform_1(%arg0: i32) -> (i32, i32, i32) {
    %c0_i32 = arith.constant 0 : i32
    %c0_i32_0 = arith.constant 0 : i32
    %c0_i32_1 = arith.constant 0 : i32
    %c0_i32_2 = arith.constant 0 : i32
    return %c0_i32, %c0_i32_0, %c0_i32_1 : i32, i32, i32
  }
  func.func @transform_2(%arg0: i32) -> (i32, i32, i32) {
    %c0_i32 = arith.constant 0 : i32
    %c0_i32_0 = arith.constant 0 : i32
    %c0_i32_1 = arith.constant 0 : i32
    %c0_i32_2 = arith.constant 0 : i32
    return %c0_i32, %c0_i32_0, %c0_i32_1 : i32, i32, i32
  }
  func.func @transform_3(%arg0: i32) -> (i32, i32) {
    %c0_i32 = arith.constant 0 : i32
    %c0_i32_0 = arith.constant 0 : i32
    %c0_i32_1 = arith.constant 0 : i32
    return %c0_i32, %c0_i32_0 : i32, i32
  }
  func.func @transform_4(%arg0: i32) -> (i32, i32) {
    %c0_i32 = arith.constant 0 : i32
    %c0_i32_0 = arith.constant 0 : i32
    %c0_i32_1 = arith.constant 0 : i32
    return %c0_i32, %c0_i32_0 : i32, i32
  }
}

</mosaic_0001>

<bundles_post_ra>
// kernel: tpu_custom_call.1
= control target key start
LH: loop header
LB: loop body
LE: loop exit
PB: predicated region body
PF: predicated region fallthrough
CT: control target
= control target key end

     0   :  { %10 = vsyncpa [#allocation3], 0  ;;  %s542_s0 = inlined_call_operand.hbm [shape: f32[2,16,64], index: 0, kind: input, shape index: {}]   ;;  %s543_s1 = inlined_call_operand.hbm [shape: f32[2,16,64], index: 1, kind: input, shape index: {}]   ;;  %s544_s2 = inlined_call_operand.vmem [shape: f32[2,1,64], index: 2, kind: input, shape index: {}]   ;;  %s545_s3 = inlined_call_operand.hbm [shape: f32[2,64], index: 3, kind: output, shape index: {0}]   ;;  %s546_s4 = inlined_call_operand.hbm [shape: f32[2,64], index: 4, kind: output, shape index: {1}]  }
   0x1   :  { %11 = vsyncpa [#allocation6], 0 }
   0x2   :  { %12 = vsyncpa [#allocation4], 0 }
   0x3   :  { %13 = vsyncpa [#allocation9], 0  ;;  %s427_s15 = smov [#allocation2]  }
   0x4   :  { %s19_s16 = sshll.u32 %s427_s15, 4  ;;  %s20_s16 = int_to_ptr.vmem [resolvable:$true] %s19_s16 }
   0x5   :  { %s347_s17 = scalar_lea.vmem %s20_s16, 512  ;;  %p352_p1 = scmp.lt.s32.totalorder %s20_s16, %s20_s16 }
   0x6   :  { %p348_p0 = scmp.ne.s32.totalorder %s20_s16, %s347_s17  ;;  %p353_p2 = scmp.lt.s32.totalorder %s347_s17, %s347_s17 }
   0x8   :  { %p354_p3 = por %p353_p2, %p352_p1 }
   0xa   :  { %p355_p4 = pnand %p354_p3, %p348_p0 }
   0xc   :  { %358 = shalt.err (!%p355_p4)
}
   0xd   :  { %s428_s18 = smov 128   ;;  %s429_s19 = smov 8  }
   0xe   :  { %25 = dma.hbm_to_vmem [thread:$0]  %s542_s0, 512, %s20_s16, [#allocation3], %s428_s18, %s428_s18, %s429_s19  }
   0xf   :  { %s430_s22 = smov [#allocation5]  }
  0x10   :  { %s31_s23 = sshll.u32 %s430_s22, 4  ;;  %s32_s23 = int_to_ptr.vmem [resolvable:$true] %s31_s23 }
  0x11   :  { %s367_s24 = scalar_lea.vmem %s32_s23, 512  ;;  %p372_p6 = scmp.lt.s32.totalorder %s32_s23, %s32_s23 }
  0x12   :  { %p368_p5 = scmp.ne.s32.totalorder %s32_s23, %s367_s24  ;;  %p373_p7 = scmp.lt.s32.totalorder %s367_s24, %s367_s24 }
  0x14   :  { %p374_p8 = por %p373_p7, %p372_p6 }
  0x16   :  { %p375_p9 = pnand %p374_p8, %p368_p5 }
  0x18   :  { %378 = shalt.err (!%p375_p9)
}
  0x19   :  { %37 = dma.hbm_to_vmem [thread:$0]  %s543_s1, 512, %s32_s23, [#allocation6], %s428_s18, %s428_s18, %s429_s19  }
  0x1a   :  { %419 = dma.done.wait [#allocation3], 512  }
  0x1b   :  { %420 = vsyncadd [#allocation3], 4294966784 }
  0x1c   :  { %421 = dma.done.wait [#allocation6], 512  }
  0x1d   :  { %422 = vsyncadd [#allocation6], 4294966784  ;;  %v48_v0 = vld [vmem:[#allocation2 + $0x10] sm:$0xff]  ;;  %v49_v1 = vld [vmem:[#allocation2 + $0x18] sm:$0xff]  ;;  %vm60_vm0 = vcmask 523264   ;;  %v147_v38 = vlaneseq  ;;  %vm270_vm9 = vcmask 1041409  }
  0x1e   :  { %v58_v2 = vmul.f32 %v48_v0, %v48_v0  ;;  %v59_v3 = vmul.f32 %v49_v1, %v49_v1  ;;  %v46_v4 = vld [vmem:[#allocation2] sm:$0xff]  ;;  %v47_v5 = vld [vmem:[#allocation2 + $0x8] sm:$0xff]  ;;  %v52_v61 = vld [vmem:[#allocation5 + $0x10] sm:$0xff]  ;;  %vm273_vm10 = vcmask 517120   ;;  %s432_s30 = smov [#allocation8]  }
  0x1f   :  { %v56_v6 = vmul.f32 %v46_v4, %v46_v4  ;;  %v57_v7 = vmul.f32 %v47_v5, %v47_v5  ;;  %v148_v39 = vshrl.u32 %v147_v38, 7  ;;  %v471_v41 = vld [vmem:[%s544_s2 + $0x1] sm:$0x1]  ;;  %v476_v42 = vld [vmem:[%s544_s2] sm:$0x1]  ;;  %v51_v60 = vld [vmem:[#allocation5 + $0x8] sm:$0xff] }
  0x20   :  { %v70_v8 = vsel %vm60_vm0, %v58_v2, 0.0  ;;  %v71_v9 = vsel %vm60_vm0, %v59_v3, 0.0  ;;  %v50_v59 = vld [vmem:[#allocation5] sm:$0xff]  ;;  %v53_v62 = vld [vmem:[#allocation5 + $0x18] sm:$0xff]  ;;  %s431_s2 = smov [#allocation7]   ;;  %s303_s5 = sshll.u32 %s432_s30, 4  ;;  %s304_s5 = int_to_ptr.vmem [resolvable:$true] %s303_s5 }
  0x21   :  { %v72_v10 = vadd.f32 %v71_v9, %v70_v8  ;;  %v61_v11 = vsel %vm60_vm0, %v56_v6, 0.0  ;;  %v62_v12 = vsel %vm60_vm0, %v57_v7, 0.0  ;;  %v149_v40 = vsub.s32 0, %v148_v39  ;;  %s293_s29 = sshll.u32 %s431_s2, 4  ;;  %s294_s29 = int_to_ptr.vmem [resolvable:$true] %s293_s29 }
  0x22   :  { %v63_v13 = vadd.f32 %v62_v12, %v61_v11  ;;  %v101_v63 = vmul.f32 %v50_v59, %v50_v59  ;;  %v104_v2 = vmul.f32 %v53_v62, %v53_v62  ;;  %s379_s6 = scalar_lea.vmem %s294_s29, 32  ;;  %p384_p11 = scmp.lt.s32.totalorder %s294_s29, %s294_s29 }
  0x23   :  { %v73_v14 = vrot.slane %v72_v10, 4  ;;  %v154_v43 = vrot.slane %v471_v41, %v149_v40  ;;  %v150_v45 = vrot.slane %v476_v42, %v149_v40  ;;  %p380_p10 = scmp.ne.s32.totalorder %s294_s29, %s379_s6  ;;  %p385_p12 = scmp.lt.s32.totalorder %s379_s6, %s379_s6 }
  0x24   :  { %v64_v15 = vrot.slane %v63_v13, 4  ;;  %v105_v3 = vsel %vm60_vm0, %v101_v63, 0.0  ;;  %v115_v6 = vsel %vm60_vm0, %v104_v2, 0.0 }
  0x25   :  { %v74_v16 = vadd.f32 %v73_v14, %v72_v10  ;;  %p386_p13 = por %p385_p12, %p384_p11 }
  0x26   :  { %v65_v17 = vadd.f32 %v64_v15, %v63_v13 }
  0x27   :  { %v75_v18 = vrot.slane %v74_v16, 2  ;;  %p387_p0 = pnand %p386_p13, %p380_p10 }
  0x28   :  { %v66_v19 = vrot.slane %v65_v17, 2 }
  0x29   :  { %v76_v20 = vadd.f32 %v75_v18, %v74_v16 }
  0x2a   :  { %v67_v21 = vadd.f32 %v66_v19, %v65_v17 }
  0x2b   :  { %v77_v22 = vrot.slane %v76_v20, 1 }
  0x2c   :  { %v68_v23 = vrot.slane %v67_v21, 1 }
  0x2d   :  { %v78_v24 = vadd.f32 %v77_v22, %v76_v20 }
  0x2e   :  { %v69_v25 = vadd.f32 %v68_v23, %v67_v21 }
  0x2f   :  { %323 = vrsqrt.f32 %v78_v24  ;;  %vm88_vm1 = vcmp.eq.f32.partialorder %v78_v24, inf  ;;  %v91_v27 = vand.u32 2147483648, %v78_v24  ;;  %vm90_vm2 = vcmp.eq.f32.partialorder %v78_v24, 0.0 }
  0x30   :  { %325 = vrsqrt.f32 %v69_v25  ;;  %vm81_vm3 = vcmp.eq.f32.partialorder %v69_v25, inf  ;;  %v84_v30 = vand.u32 2147483648, %v69_v25  ;;  %vm83_vm4 = vcmp.eq.f32.partialorder %v69_v25, 0.0 }
  0x3c   :  { %v324_v26 = vpop.eup %323 }
  0x3d   :  { %v326_v28 = vpop.eup %325  ;;  %v87_v29 = vmul.f32 %v324_v26, %v78_v24 }
  0x3e   :  { %v80_v31 = vmul.f32 %v326_v28, %v69_v25 }
  0x3f   :  { %v89_v32 = vsel %vm88_vm1, %v78_v24, %v87_v29 }
  0x40   :  { %v92_v33 = vsel %vm90_vm2, %v91_v27, %v89_v32  ;;  %v82_v34 = vsel %vm81_vm3, %v69_v25, %v80_v31 }
  0x41   :  { %v94_v35 = vmax.f32 %v92_v33, 1e-12  ;;  %v85_v36 = vsel %vm83_vm4, %v84_v30, %v82_v34 }
  0x42   :  { %v93_v37 = vmax.f32 %v85_v36, 1e-12 }
  0x43   :  { %327 = vrcp.f32 %v94_v35 }
  0x44   :  { %329 = vrcp.f32 %v93_v37 }
  0x50   :  { %v328_v44 = vpop.eup %327 }
  0x51   :  { %v330_v46 = vpop.eup %329  ;;  %v480_v47 = vmul.f32 %v328_v44, %v48_v0  ;;  %v482_v48 = vmul.f32 %v328_v44, %v49_v1  ;;  %v102_v0 = vmul.f32 %v51_v60, %v51_v60  ;;  %v103_v1 = vmul.f32 %v52_v61, %v52_v61 }
  0x52   :  { %v484_v49 = vmul.f32 %v330_v46, %v46_v4  ;;  %v486_v50 = vmul.f32 %v330_v46, %v47_v5 }
  0x53   :  { %v159_v51 = vmul.f32 %v154_v43, %v480_v47  ;;  %v160_v52 = vmul.f32 %v154_v43, %v482_v48  ;;  %v106_v4 = vsel %vm60_vm0, %v102_v0, 0.0  ;;  %v114_v5 = vsel %vm60_vm0, %v103_v1, 0.0 }
  0x54   :  { %v157_v53 = vmul.f32 %v150_v45, %v484_v49  ;;  %v158_v54 = vmul.f32 %v150_v45, %v486_v50  ;;  %v107_v7 = vadd.f32 %v106_v4, %v105_v3  ;;  %v116_v8 = vadd.f32 %v115_v6, %v114_v5 }
  0x55   :  { %v167_v55 = vsel %vm60_vm0, %v159_v51, 0.0  ;;  %v170_v57 = vsel %vm60_vm0, %v160_v52, 0.0  ;;  %v219_v39 = vmul.f32 %v480_v47, %v480_v47  ;;  %v220_v40 = vmul.f32 %v482_v48, %v482_v48 }
  0x56   :  { %168 = vadd.xlane.f32.xlu0 %v167_v55  ;;  %v161_v56 = vsel %vm60_vm0, %v157_v53, 0.0  ;;  %v164_v58 = vsel %vm60_vm0, %v158_v54, 0.0  ;;  %v108_v9 = vrot.slane %v107_v7, 4  ;;  %v117_v10 = vrot.slane %v116_v8, 4 }
  0x57   :  { %162 = vadd.xlane.f32.xlu1 %v161_v56  ;;  %v217_v43 = vmul.f32 %v484_v49, %v484_v49  ;;  %v218_v44 = vmul.f32 %v486_v50, %v486_v50  ;;  %v230_v53 = vsel %vm60_vm0, %v219_v39, 0.0  ;;  %v231_v54 = vsel %vm60_vm0, %v220_v40, 0.0 }
  0x58   :  { %v109_v11 = vadd.f32 %v108_v9, %v107_v7  ;;  %v118_v12 = vadd.f32 %v117_v10, %v116_v8 }
  0x59   :  { %v221_v55 = vsel %vm60_vm0, %v217_v43, 0.0  ;;  %v222_v56 = vsel %vm60_vm0, %v218_v44, 0.0 }
  0x5a   :  { %171 = vadd.xlane.f32.xlu0 %v170_v57  ;;  %v110_v13 = vrot.slane %v109_v11, 2  ;;  %v119_v14 = vrot.slane %v118_v12, 2 }
  0x5b   :  { %165 = vadd.xlane.f32.xlu1 %v164_v58 }
  0x5c   :  { %v111_v15 = vadd.f32 %v110_v13, %v109_v11  ;;  %v120_v16 = vadd.f32 %v119_v14, %v118_v12 }
  0x5e   :  { %v112_v17 = vrot.slane %v111_v15, 1  ;;  %v121_v18 = vrot.slane %v120_v16, 1 }
  0x60   :  { %v113_v19 = vadd.f32 %v112_v17, %v111_v15  ;;  %v122_v20 = vadd.f32 %v121_v18, %v120_v16 }
  0x62   :  { %331 = vrsqrt.f32 %v113_v19  ;;  %vm125_vm5 = vcmp.eq.f32.partialorder %v113_v19, inf  ;;  %vm132_vm6 = vcmp.eq.f32.partialorder %v122_v20, inf  ;;  %v128_v25 = vand.u32 2147483648, %v113_v19 }
  0x63   :  { %333 = vrsqrt.f32 %v122_v20  ;;  %vm127_vm7 = vcmp.eq.f32.partialorder %v113_v19, 0.0  ;;  %v135_v27 = vand.u32 2147483648, %v122_v20  ;;  %vm134_vm8 = vcmp.eq.f32.partialorder %v122_v20, 0.0 }
  0x6f   :  { %v332_v21 = vpop.eup %331 }
  0x70   :  { %v334_v22 = vpop.eup %333  ;;  %v124_v23 = vmul.f32 %v332_v21, %v113_v19 }
  0x71   :  { %v131_v24 = vmul.f32 %v334_v22, %v122_v20 }
  0x72   :  { %v126_v26 = vsel %vm125_vm5, %v113_v19, %v124_v23 }
  0x73   :  { %v133_v28 = vsel %vm132_vm6, %v122_v20, %v131_v24  ;;  %v129_v29 = vsel %vm127_vm7, %v128_v25, %v126_v26 }
  0x74   :  { %v136_v30 = vsel %vm134_vm8, %v135_v27, %v133_v28  ;;  %v137_v31 = vmax.f32 %v129_v29, 1e-12 }
  0x75   :  { %v138_v32 = vmax.f32 %v136_v30, 1e-12 }
  0x76   :  { %335 = vrcp.f32 %v137_v31 }
  0x77   :  { %337 = vrcp.f32 %v138_v32 }
  0x83   :  { %v336_v33 = vpop.eup %335 }
  0x84   :  { %v338_v34 = vpop.eup %337  ;;  %v140_v35 = vmul.f32 %v336_v33, %v50_v59  ;;  %v141_v37 = vmul.f32 %v336_v33, %v51_v60 }
  0x85   :  { %v144_v36 = vmul.f32 %v338_v34, %v53_v62  ;;  %v143_v38 = vmul.f32 %v338_v34, %v52_v61  ;;  %v232_v61 = vadd.f32 %v231_v54, %v230_v53  ;;  %v223_v62 = vadd.f32 %v222_v56, %v221_v55 }
  0x86   :  { %v239_v46 = vmul.f32 %v140_v35, %v484_v49  ;;  %v240_v52 = vmul.f32 %v141_v37, %v486_v50 }
  0x87   :  { %v241_v45 = vmul.f32 %v143_v38, %v480_v47  ;;  %v242_v51 = vmul.f32 %v144_v36, %v482_v48  ;;  %v233_v1 = vrot.slane %v232_v61, 4  ;;  %v224_v2 = vrot.slane %v223_v62, 4 }
  0x88   :  { %v243_v58 = vsel %vm60_vm0, %v239_v46, 0.0  ;;  %v244_v60 = vsel %vm60_vm0, %v240_v52, 0.0 }
  0x89   :  { %v252_v57 = vsel %vm60_vm0, %v241_v45, 0.0  ;;  %v253_v59 = vsel %vm60_vm0, %v242_v51, 0.0  ;;  %v245_v0 = vadd.f32 %v244_v60, %v243_v58  ;;  %v234_v5 = vadd.f32 %v233_v1, %v232_v61 }
  0x8a   :  { %v254_v63 = vadd.f32 %v253_v59, %v252_v57  ;;  %v225_v6 = vadd.f32 %v224_v2, %v223_v62 }
  0x8b   :  { %v246_v4 = vrot.slane %v245_v0, 4  ;;  %v235_v9 = vrot.slane %v234_v5, 2 }
  0x8c   :  { %v255_v3 = vrot.slane %v254_v63, 4  ;;  %v226_v10 = vrot.slane %v225_v6, 2 }
  0x8d   :  { %v247_v8 = vadd.f32 %v246_v4, %v245_v0  ;;  %v236_v19 = vadd.f32 %v235_v9, %v234_v5 }
  0x8e   :  { %v256_v7 = vadd.f32 %v255_v3, %v254_v63  ;;  %v227_v20 = vadd.f32 %v226_v10, %v225_v6 }
  0x8f   :  { %v248_v14 = vrot.slane %v247_v8, 2  ;;  %v237_v39 = vrot.slane %v236_v19, 1 }
  0x90   :  { %v257_v13 = vrot.slane %v256_v7, 2  ;;  %v228_v43 = vrot.slane %v227_v20, 1 }
  0x91   :  { %v249_v25 = vadd.f32 %v248_v14, %v247_v8  ;;  %v238_v55 = vadd.f32 %v237_v39, %v236_v19 }
  0x92   :  { %v258_v22 = vadd.f32 %v257_v13, %v256_v7  ;;  %v229_v59 = vadd.f32 %v228_v43, %v227_v20 }
  0x93   :  { %v250_v44 = vrot.slane %v249_v25, 1  ;;  %v262_v3 = vmul.f32 %v238_v55, %v471_v41 }
  0x94   :  { %v259_v40 = vrot.slane %v258_v22, 1  ;;  %v261_v7 = vmul.f32 %v229_v59, %v476_v42 }
  0x95   :  { %v251_v62 = vadd.f32 %v250_v44, %v249_v25 }
  0x96   :  { %v260_v58 = vadd.f32 %v259_v40, %v258_v22 }
  0x97   :  { %v275_v10 = vmul.f32 %v251_v62, %v476_v42 }
  0x98   :  { %v276_v6 = vmul.f32 %v260_v58, %v471_v41 }
  0xdf   :  { %v169_v11 = vpop.xlane.xlu0 %168 }
  0xe0   :  { %v163_v12 = vpop.xlane.xlu1 %162  ;;  %v175_v15 = vmul.f32 %v169_v11, %v480_v47  ;;  %v197_v16 = vmul.f32 %v169_v11, %v143_v38 }
  0xe1   :  { %v173_v17 = vmul.f32 %v163_v12, %v484_v49  ;;  %v195_v18 = vmul.f32 %v163_v12, %v140_v35 }
  0xe2   :  { %v186_v27 = vsel %vm60_vm0, %v175_v15, 0.0  ;;  %v208_v28 = vsel %vm60_vm0, %v197_v16, 0.0 }
  0xe3   :  { %v172_v21 = vpop.xlane.xlu0 %171  ;;  %v177_v30 = vsel %vm60_vm0, %v173_v17, 0.0  ;;  %v199_v49 = vsel %vm60_vm0, %v195_v18, 0.0 }
  0xe4   :  { %v176_v23 = vmul.f32 %v172_v21, %v482_v48  ;;  %v198_v24 = vmul.f32 %v172_v21, %v144_v36  ;;  %v166_v26 = vpop.xlane.xlu1 %165 }
  0xe5   :  { %v174_v29 = vmul.f32 %v166_v26, %v486_v50  ;;  %v196_v47 = vmul.f32 %v166_v26, %v141_v37 }
  0xe6   :  { %v187_v31 = vsel %vm60_vm0, %v176_v23, 0.0  ;;  %v209_v32 = vsel %vm60_vm0, %v198_v24, 0.0 }
  0xe7   :  { %v188_v33 = vadd.f32 %v187_v31, %v186_v27  ;;  %v210_v48 = vadd.f32 %v209_v32, %v208_v28  ;;  %v178_v34 = vsel %vm60_vm0, %v174_v29, 0.0  ;;  %v200_v35 = vsel %vm60_vm0, %v196_v47, 0.0 }
  0xe8   :  { %v179_v36 = vadd.f32 %v178_v34, %v177_v30  ;;  %v201_v38 = vadd.f32 %v200_v35, %v199_v49 }
  0xe9   :  { %v189_v50 = vrot.slane %v188_v33, 4  ;;  %v211_v37 = vrot.slane %v210_v48, 4 }
  0xea   :  { %v180_v45 = vrot.slane %v179_v36, 4  ;;  %v202_v46 = vrot.slane %v201_v38, 4 }
  0xeb   :  { %v190_v51 = vadd.f32 %v189_v50, %v188_v33  ;;  %v212_v52 = vadd.f32 %v211_v37, %v210_v48 }
  0xec   :  { %v181_v53 = vadd.f32 %v180_v45, %v179_v36  ;;  %v203_v54 = vadd.f32 %v202_v46, %v201_v38 }
  0xed   :  { %v191_v56 = vrot.slane %v190_v51, 2  ;;  %v213_v57 = vrot.slane %v212_v52, 2 }
  0xee   :  { %v182_v60 = vrot.slane %v181_v53, 2  ;;  %v204_v61 = vrot.slane %v203_v54, 2 }
  0xef   :  { %v192_v63 = vadd.f32 %v191_v56, %v190_v51  ;;  %v214_v0 = vadd.f32 %v213_v57, %v212_v52 }
  0xf0   :  { %v183_v1 = vadd.f32 %v182_v60, %v181_v53  ;;  %v205_v2 = vadd.f32 %v204_v61, %v203_v54 }
  0xf1   :  { %v193_v4 = vrot.slane %v192_v63, 1  ;;  %v215_v5 = vrot.slane %v214_v0, 1 }
  0xf2   :  { %v184_v8 = vrot.slane %v183_v1, 1  ;;  %v206_v9 = vrot.slane %v205_v2, 1 }
  0xf3   :  { %v194_v11 = vadd.f32 %v193_v4, %v192_v63  ;;  %v216_v12 = vadd.f32 %v215_v5, %v214_v0 }
  0xf4   :  { %v185_v13 = vadd.f32 %v184_v8, %v183_v1  ;;  %v207_v14 = vadd.f32 %v206_v9, %v205_v2 }
  0xf5   :  { %v264_v15 = vsub.f32 %v194_v11, %v262_v3  ;;  %v278_v16 = vsub.f32 %v216_v12, %v276_v6 }
  0xf6   :  { %v263_v17 = vsub.f32 %v185_v13, %v261_v7  ;;  %v277_v18 = vsub.f32 %v207_v14, %v275_v10 }
  0xf7   :  { %v266_v19 = vmul.f32 0.015625, %v264_v15  ;;  %v280_v20 = vmul.f32 0.015625, %v278_v16 }
  0xf8   :  { %v265_v41 = vmul.f32 0.015625, %v263_v17  ;;  %v279_v22 = vmul.f32 0.015625, %v277_v18 }
  0xf9   :  { %v269_v21 = vrot.slane %v266_v19, 7  ;;  %v283_v42 = vrot.slane %v280_v20, 7 }
  0xfb   :  { %v271_v23 = vsel %vm270_vm9, %v269_v21, %v265_v41  ;;  %v284_v24 = vsel %vm270_vm9, %v283_v42, %v279_v22 }
  0xfc   :  { %274 = vst.msk [vmem:[#allocation7] sm:$0x3] %vm273_vm10, %v271_v23  ;;  %286 = vst.msk [vmem:[#allocation8] sm:$0x3] %vm273_vm10, %v284_v24 }
  0xfd   :  { %390 = shalt.err (!%p387_p0)
}
  0xfe   :  { %296 = dma.vmem_to_hbm [thread:$0]  %s294_s29, 32, %s545_s3, [#allocation4]  }
  0xff   :  { %s399_s9 = scalar_lea.vmem %s304_s5, 32  ;;  %p404_p2 = scmp.lt.s32.totalorder %s304_s5, %s304_s5 }
 0x100   :  { %p400_p1 = scmp.ne.s32.totalorder %s304_s5, %s399_s9  ;;  %p405_p3 = scmp.lt.s32.totalorder %s399_s9, %s399_s9 }
 0x102   :  { %p406_p4 = por %p405_p3, %p404_p2 }
 0x104   :  { %p407_p5 = pnand %p406_p4, %p400_p1 }
 0x106   :  { %410 = shalt.err (!%p407_p5)
}
 0x107   :  { %306 = dma.vmem_to_hbm [thread:$0]  %s304_s5, 32, %s546_s4, [#allocation9]  }
 0x108   :  { %423 = dma.done.wait [#allocation4], 32  }
 0x109   :  { %424 = vsyncadd [#allocation4], 4294967264 }
 0x10a   :  { %425 = dma.done.wait [#allocation9], 32  }
 0x10b   :  { %426 = vsyncadd [#allocation9], 4294967264 }
 0x10c   :  { %313 = vsyncpa [#allocation3], 1 }
 0x10d   :  { %314 = vsyncpa [#allocation6], 1 }
 0x10e   :  { %315 = vsyncpa [#allocation4], 1 }
 0x10f   :  { %316 = vsyncpa [#allocation9], 1 }

</bundles_post_ra>
